<compile_context>
chip_gen: v6e
topology: v6e:2x2x1
jax: 0.10.0
libtpu: 0.0.40
codegen_flags: <defaults>
</compile_context>

<pallas_src>
import jax
import jax.numpy as jnp
from jax.experimental import pallas as pl
from jax.experimental.pallas import tpu as pltpu


def _round_up(x, m):
    return ((x + m - 1) // m) * m


def dqn_kernel(x_ref, w1_ref, b1_ref, w2_ref, b2_ref, w3_ref, b3_ref, o_ref):
    """One batch tile of the fused 3-layer MLP, all float32.

    x_ref : (TB, D)   f32
    w*_ref: (K, N)    f32 (natural, unpadded shapes, VMEM-resident)
    b*_ref: (1, N)    f32
    o_ref : (TB, A)   f32 (full-dim action axis -> tiny writeback)
    """
    # Layer 1: (TB, D) @ (D, 256), f32 accumulate; bias + ReLU on the VPU.
    h1 = jnp.dot(x_ref[...], w1_ref[...], preferred_element_type=jnp.float32)
    h1 = jnp.maximum(h1 + b1_ref[...], 0.0)

    # Layer 2: (TB, 256) @ (256, 128).
    h2 = jnp.dot(h1, w2_ref[...], preferred_element_type=jnp.float32)
    h2 = jnp.maximum(h2 + b2_ref[...], 0.0)

    # Output layer: (TB, 128) @ (128, A); store only the A useful columns.
    out = jnp.dot(h2, w3_ref[...], preferred_element_type=jnp.float32)
    o_ref[...] = (out + b3_ref[...]).astype(o_ref.dtype)


def _choose_batch_tiling(B, block_b):
    """Pick (TB, B_pad): large tiles to amortize per-step overhead, >=2 tiles
    for big batches (v7x dual TensorCore), TB from cdiv to bound waste."""
    B8 = _round_up(B, 8)
    if B8 >= 512:
        n_tiles = max(2, pl.cdiv(B8, block_b))
    else:
        # Tiny (action-selection) batches: a single exact tile, grid = 1.
        n_tiles = 1
    TB = _round_up(pl.cdiv(B8, n_tiles), 8)
    return TB, TB * n_tiles


def prepare_params(w1, b1, w2, b2, w3, b3):
    """Canonicalize params ONCE (f32, 2-D row biases); nothing is padded or
    re-cast per forward call."""
    f32 = lambda a: jnp.asarray(a, jnp.float32)
    return (f32(w1), f32(b1).reshape(1, -1),
            f32(w2), f32(b2).reshape(1, -1),
            f32(w3), f32(b3).reshape(1, -1))


def dqn_forward(x, params, *, block_b=2048):
    """x: (B, window_size, num_features) f32. Returns (B, num_actions) f32."""
    w1, b1, w2, b2, w3, b3 = params
    B = x.shape[0]
    D = w1.shape[0]           # window_size * num_features
    H1 = w1.shape[1]          # 256
    H2 = w2.shape[1]          # 128
    A = w3.shape[1]           # num_actions

    # Flatten exactly like torch's x.view(x.size(0), -1); no column padding,
    # no dtype cast -> the kernel's x DMA reads the natural f32 rows.
    x_flat = x.reshape(B, -1).astype(jnp.float32)

    TB, B_pad = _choose_batch_tiling(B, block_b)
    x_p = x_flat if B_pad == B else jnp.pad(x_flat, ((0, B_pad - B), (0, 0)))

    grid = (B_pad // TB,)
    const = lambda i: (0, 0)   # weights/biases: single block, VMEM-resident

    out_padded = pl.pallas_call(
        dqn_kernel,
        out_shape=jax.ShapeDtypeStruct((B_pad, A), jnp.float32),
        grid=grid,
        in_specs=[
            pl.BlockSpec((TB, D), lambda i: (i, 0)),   # x batch tile (full D)
            pl.BlockSpec((D, H1), const),              # w1
            pl.BlockSpec((1, H1), const),              # b1
            pl.BlockSpec((H1, H2), const),             # w2
            pl.BlockSpec((1, H2), const),              # b2
            pl.BlockSpec((H2, A), const),              # w3 (full A)
            pl.BlockSpec((1, A), const),               # b3
        ],
        out_specs=pl.BlockSpec((TB, A), lambda i: (i, 0)),
        compiler_params=pltpu.CompilerParams(
            dimension_semantics=("parallel",)),
    )(x_p, w1, b1, w2, b2, w3, b3)

    # Strip batch padding (free; fuses under jit).
    return out_padded[:B]


def init_params(key, window_size, num_features, num_actions):
    """Deterministic init mimicking nn.Linear's uniform(-1/sqrt(fan_in), ...)."""
    d_in = window_size * num_features
    dims = [(d_in, 256), (256, 128), (128, num_actions)]
    params = []
    for i, (fi, fo) in enumerate(dims):
        kw, kb = jax.random.split(jax.random.fold_in(key, i))
        bound = 1.0 / (fi ** 0.5)
        w = jax.random.uniform(kw, (fi, fo), jnp.float32, -bound, bound)
        b = jax.random.uniform(kb, (1, fo), jnp.float32, -bound, bound)
        params += [w, b]
    return tuple(params)


if __name__ == "__main__":
    batch = 8
    window_size = 8
    num_features = 4
    num_actions = 3

    key = jax.random.PRNGKey(0)
    k_x, k_p = jax.random.split(key)

    x = jax.random.normal(k_x, (batch, window_size, num_features), jnp.float32)
    params = prepare_params(*init_params(k_p, window_size, num_features,
                                         num_actions))

    # jit the whole forward so wrapper reshape/pad/slice fuse around the kernel.
    dqn_apply = jax.jit(dqn_forward)
    q_values = jax.block_until_ready(dqn_apply(x, params))
    assert q_values.shape == (batch, num_actions)

    # Pure-f32 reference mirroring the PyTorch module.
    w1, b1, w2, b2, w3, b3 = params
    xf = x.reshape(batch, -1)
    h1 = jnp.maximum(xf @ w1 + b1, 0.0)
    h2 = jnp.maximum(h1 @ w2 + b2, 0.0)
    ref = h2 @ w3 + b3
    assert jnp.allclose(q_values, ref, atol=2e-2, rtol=2e-2), (
        float(jnp.max(jnp.abs(q_values - ref))))

    print("KERNEL_OK")
</pallas_src>

<mosaic_0001>
module attributes {stable_mosaic.version = 11 : i64} {
  func.func @dqn_kernel(%arg0: i32, %arg1: memref<8x32xf32, #tpu.memory_space<vmem>>, %arg2: memref<32x256xf32, #tpu.memory_space<vmem>>, %arg3: memref<1x256xf32, #tpu.memory_space<vmem>>, %arg4: memref<256x128xf32, #tpu.memory_space<vmem>>, %arg5: memref<1x128xf32, #tpu.memory_space<vmem>>, %arg6: memref<128x3xf32, #tpu.memory_space<vmem>>, %arg7: memref<1x3xf32, #tpu.memory_space<vmem>>, %arg8: memref<8x3xf32, #tpu.memory_space<vmem>>) attributes {dimension_semantics = [#tpu.dimension_semantics<parallel>], iteration_bounds = array<i64: 1>, scalar_prefetch = 0 : i64, scratch_operands = 0 : i64, tpu.core_type = #tpu.core_type<tc>, window_params = [{transform_indices = @transform_0, window_bounds = array<i64: 8, 32>}, {pipeline_mode = #tpu.pipeline_mode<synchronous>, transform_indices = @transform_1, window_bounds = array<i64: 32, 256>}, {pipeline_mode = #tpu.pipeline_mode<synchronous>, transform_indices = @transform_2, window_bounds = array<i64: 1, 256>}, {pipeline_mode = #tpu.pipeline_mode<synchronous>, transform_indices = @transform_3, window_bounds = array<i64: 256, 128>}, {pipeline_mode = #tpu.pipeline_mode<synchronous>, transform_indices = @transform_4, window_bounds = array<i64: 1, 128>}, {pipeline_mode = #tpu.pipeline_mode<synchronous>, transform_indices = @transform_5, window_bounds = array<i64: 128, 3>}, {pipeline_mode = #tpu.pipeline_mode<synchronous>, transform_indices = @transform_6, window_bounds = array<i64: 1, 3>}, {transform_indices = @transform_7, window_bounds = array<i64: 8, 3>}]} {
    %c0 = arith.constant 0 : index
    %c0_0 = arith.constant 0 : index
    %0 = vector.load %arg1[%c0, %c0_0] : memref<8x32xf32, #tpu.memory_space<vmem>>, vector<8x32xf32>
    %c0_1 = arith.constant 0 : index
    %c0_2 = arith.constant 0 : index
    %1 = vector.load %arg2[%c0_1, %c0_2] : memref<32x256xf32, #tpu.memory_space<vmem>>, vector<32x256xf32>
    %cst = arith.constant dense<0.000000e+00> : vector<8x256xf32>
    %2 = tpu.matmul %0, %1, %cst {dimension_numbers = #tpu.dot_dimension_numbers<[1], [0], [0], [1], [0, 0, 1, 1], [], []>} : vector<8x32xf32>, vector<32x256xf32>, vector<8x256xf32> -> vector<8x256xf32>
    %c0_3 = arith.constant 0 : index
    %c0_4 = arith.constant 0 : index
    %3 = vector.load %arg3[%c0_3, %c0_4] : memref<1x256xf32, #tpu.memory_space<vmem>>, vector<1x256xf32>
    %4 = vector.broadcast %3 : vector<1x256xf32> to vector<8x256xf32>
    %5 = arith.addf %2, %4 : vector<8x256xf32>
    %cst_5 = arith.constant 0.000000e+00 : f32
    %6 = vector.broadcast %cst_5 : f32 to vector<8x256xf32>
    %7 = arith.maximumf %5, %6 : vector<8x256xf32>
    %c0_6 = arith.constant 0 : index
    %c0_7 = arith.constant 0 : index
    %8 = vector.load %arg4[%c0_6, %c0_7] : memref<256x128xf32, #tpu.memory_space<vmem>>, vector<256x128xf32>
    %cst_8 = arith.constant dense<0.000000e+00> : vector<8x128xf32>
    %9 = tpu.matmul %7, %8, %cst_8 {dimension_numbers = #tpu.dot_dimension_numbers<[1], [0], [0], [1], [0, 0, 1, 1], [], []>} : vector<8x256xf32>, vector<256x128xf32>, vector<8x128xf32> -> vector<8x128xf32>
    %c0_9 = arith.constant 0 : index
    %c0_10 = arith.constant 0 : index
    %10 = vector.load %arg5[%c0_9, %c0_10] : memref<1x128xf32, #tpu.memory_space<vmem>>, vector<1x128xf32>
    %11 = vector.broadcast %10 : vector<1x128xf32> to vector<8x128xf32>
    %12 = arith.addf %9, %11 : vector<8x128xf32>
    %cst_11 = arith.constant 0.000000e+00 : f32
    %13 = vector.broadcast %cst_11 : f32 to vector<8x128xf32>
    %14 = arith.maximumf %12, %13 : vector<8x128xf32>
    %c0_12 = arith.constant 0 : index
    %c0_13 = arith.constant 0 : index
    %15 = vector.load %arg6[%c0_12, %c0_13] : memref<128x3xf32, #tpu.memory_space<vmem>>, vector<128x3xf32>
    %cst_14 = arith.constant dense<0.000000e+00> : vector<8x3xf32>
    %16 = tpu.matmul %14, %15, %cst_14 {dimension_numbers = #tpu.dot_dimension_numbers<[1], [0], [0], [1], [0, 0, 1, 1], [], []>} : vector<8x128xf32>, vector<128x3xf32>, vector<8x3xf32> -> vector<8x3xf32>
    %c0_15 = arith.constant 0 : index
    %c0_16 = arith.constant 0 : index
    %17 = vector.load %arg7[%c0_15, %c0_16] : memref<1x3xf32, #tpu.memory_space<vmem>>, vector<1x3xf32>
    %18 = vector.broadcast %17 : vector<1x3xf32> to vector<8x3xf32>
    %19 = arith.addf %16, %18 : vector<8x3xf32>
    %c0_17 = arith.constant 0 : index
    %c0_18 = arith.constant 0 : index
    %20 = vector.load %arg8[%c0_17, %c0_18] : memref<8x3xf32, #tpu.memory_space<vmem>>, vector<8x3xf32>
    tpu.vector_store %arg8[%c0_17, %c0_18], %19 {strides = array<i32>} : memref<8x3xf32, #tpu.memory_space<vmem>>, vector<8x3xf32>,
    return
  }
  func.func @transform_0(%arg0: i32) -> (i32, i32) {
    %c0_i32 = arith.constant 0 : i32
    %c0_i32_0 = arith.constant 0 : i32
    return %arg0, %c0_i32 : i32, i32
  }
  func.func @transform_1(%arg0: i32) -> (i32, i32) {
    %c0_i32 = arith.constant 0 : i32
    %c0_i32_0 = arith.constant 0 : i32
    %c0_i32_1 = arith.constant 0 : i32
    return %c0_i32, %c0_i32_0 : i32, i32
  }
  func.func @transform_2(%arg0: i32) -> (i32, i32) {
    %c0_i32 = arith.constant 0 : i32
    %c0_i32_0 = arith.constant 0 : i32
    %c0_i32_1 = arith.constant 0 : i32
    return %c0_i32, %c0_i32_0 : i32, i32
  }
  func.func @transform_3(%arg0: i32) -> (i32, i32) {
    %c0_i32 = arith.constant 0 : i32
    %c0_i32_0 = arith.constant 0 : i32
    %c0_i32_1 = arith.constant 0 : i32
    return %c0_i32, %c0_i32_0 : i32, i32
  }
  func.func @transform_4(%arg0: i32) -> (i32, i32) {
    %c0_i32 = arith.constant 0 : i32
    %c0_i32_0 = arith.constant 0 : i32
    %c0_i32_1 = arith.constant 0 : i32
    return %c0_i32, %c0_i32_0 : i32, i32
  }
  func.func @transform_5(%arg0: i32) -> (i32, i32) {
    %c0_i32 = arith.constant 0 : i32
    %c0_i32_0 = arith.constant 0 : i32
    %c0_i32_1 = arith.constant 0 : i32
    return %c0_i32, %c0_i32_0 : i32, i32
  }
  func.func @transform_6(%arg0: i32) -> (i32, i32) {
    %c0_i32 = arith.constant 0 : i32
    %c0_i32_0 = arith.constant 0 : i32
    %c0_i32_1 = arith.constant 0 : i32
    return %c0_i32, %c0_i32_0 : i32, i32
  }
  func.func @transform_7(%arg0: i32) -> (i32, i32) {
    %c0_i32 = arith.constant 0 : i32
    %c0_i32_0 = arith.constant 0 : i32
    return %arg0, %c0_i32 : i32, i32
  }
}

</mosaic_0001>

<bundles_post_ra>
// kernel: dqn_forward.1
= control target key start
LH: loop header
LB: loop body
LE: loop exit
PB: predicated region body
PF: predicated region fallthrough
CT: control target
= control target key end

     0   :  { %12 = vsyncpa [#allocation3], 0  ;;  %s465_s24 = smov [#allocation2]   ;;  %s618_s0 = inlined_call_operand.vmem [shape: f32[8,32], index: 0, kind: input, shape index: {}]   ;;  %s619_s1 = inlined_call_operand.vmem [shape: f32[32,256], index: 1, kind: input, shape index: {}]   ;;  %s620_s2 = inlined_call_operand.vmem [shape: f32[1,256], index: 2, kind: input, shape index: {}]   ;;  %s621_s3 = inlined_call_operand.hbm [shape: f32[256,128], index: 3, kind: input, shape index: {}]   ;;  %s622_s4 = inlined_call_operand.vmem [shape: f32[1,128], index: 4, kind: input, shape index: {}]   ;;  %s623_s5 = inlined_call_operand.vmem [shape: f32[128,3], index: 5, kind: input, shape index: {}]   ;;  %s624_s6 = inlined_call_operand.vmem [shape: f32[1,3], index: 6, kind: input, shape index: {}]   ;;  %s625_s7 = inlined_call_operand.vmem [shape: f32[8,3], index: 7, kind: output, shape index: {}]  }
   0x1   :  { %s24_s25 = sshll.u32 %s465_s24, 4  ;;  %s25_s25 = int_to_ptr.vmem [resolvable:$true] %s24_s25 }
   0x2   :  { %s451_s26 = scalar_lea.vmem %s25_s25, 4096  ;;  %p456_p1 = scmp.lt.s32.totalorder %s25_s25, %s25_s25 }
   0x3   :  { %p452_p0 = scmp.ne.s32.totalorder %s25_s25, %s451_s26  ;;  %p457_p2 = scmp.lt.s32.totalorder %s451_s26, %s451_s26 }
   0x5   :  { %p458_p3 = por %p457_p2, %p456_p1 }
   0x7   :  { %p459_p4 = pnand %p458_p3, %p452_p0 }
   0x9   :  { %462 = shalt.err (!%p459_p4)
}
   0xa   :  { %s466_s27 = smov 128   ;;  %s467_s28 = smov 8  }
   0xb   :  { %30 = dma.hbm_to_vmem [thread:$0]  %s621_s3, 4096, %s25_s25, [#allocation3], %s466_s27, %s466_s27, %s467_s28  }
   0xc   :  { %463 = dma.done.wait [#allocation3], 4096  }
   0xd   :  { %464 = vsyncadd [#allocation3], 4294963200  ;;  %v468_v0 = vmov 0.0   ;;  %v48_v1 = vld [vmem:[%s619_s1 + $0x38] sm:$0xff]  ;;  %v47_v2 = vld [vmem:[%s619_s1 + $0x30] sm:$0xff]  ;;  %vm61_vm0 = vcmask 261120   ;;  %v51_v53 = vlaneseq }
   0xe   :  { %129 = vmatprep.mubr.f32.mxu0 %v468_v0  ;;  %v46_v3 = vld [vmem:[%s619_s1 + $0x28] sm:$0xff]  ;;  %89 = vmatprep.subr.mxu0 %v48_v1  ;;  %v45_v4 = vld [vmem:[%s619_s1 + $0x20] sm:$0xff]  ;;  %v44_v5 = vld [vmem:[%s619_s1 + $0x18] sm:$0xff]  ;;  %vm469_vm1 = vmmov 0   ;;  %vm341_vm2 = vcmask 23552  }
   0xf   :  { %90 = vmatpush1.msra.mxu0 %v47_v2  ;;  %v43_v6 = vld [vmem:[%s619_s1 + $0x10] sm:$0xff]  ;;  %v169_v7 = vld [vmem:[#allocation2 + $0xf8] sm:$0xff]  ;;  %v42_v10 = vld [vmem:[%s619_s1 + $0x8] sm:$0xff]  ;;  %v52_v54 = vshrl.u32 %v51_v53, 7 }
  0x10   :  { %91 = vmatprep.subr.mxu0 %v46_v3  ;;  %v153_v8 = vld [vmem:[#allocation2 + $0x78] sm:$0xff]  ;;  %v168_v9 = vld [vmem:[#allocation2 + $0xf0] sm:$0xff]  ;;  %351 = vmatprep.subr.mxu1 %v169_v7  ;;  %v41_v12 = vld [vmem:[%s619_s1] sm:$0xff] }
  0x11   :  { %92 = vmatpush1.msra.mxu0 %v45_v4  ;;  %v152_v11 = vld [vmem:[#allocation2 + $0x70] sm:$0xff]  ;;  %352 = vmatpush3.msra.mxu1 %v153_v8  ;;  %v167_v13 = vld [vmem:[#allocation2 + $0xe8] sm:$0xff]  ;;  %v40_v14 = vld [vmem:[%s618_s0] sm:$0xff]  ;;  %v53_v55 = vsub.s32 0, %v52_v54  ;;  %v57_v57 = vsub.s32 1, %v52_v54 }
  0x12   :  { %93 = vmatprep.subr.mxu0 %v44_v5  ;;  %353 = vmatprep.subr.mxu1 %v168_v9  ;;  %v151_v15 = vld [vmem:[#allocation2 + $0x68] sm:$0xff]  ;;  %v166_v16 = vld [vmem:[#allocation2 + $0xe0] sm:$0xff]  ;;  %v165_v18 = vld [vmem:[#allocation2 + $0xd8] sm:$0xff] }
  0x13   :  { %94 = vmatpush1.msra.mxu0 %v43_v6  ;;  %354 = vmatpush3.msra.mxu1 %v152_v11  ;;  %v150_v17 = vld [vmem:[#allocation2 + $0x60] sm:$0xff]  ;;  %v149_v19 = vld [vmem:[#allocation2 + $0x58] sm:$0xff]  ;;  %v164_v20 = vld [vmem:[#allocation2 + $0xd0] sm:$0xff] }
  0x14   :  { %95 = vmatprep.subr.mxu0 %v42_v10  ;;  %355 = vmatprep.subr.mxu1 %v167_v13  ;;  %v148_v21 = vld [vmem:[#allocation2 + $0x50] sm:$0xff]  ;;  %v163_v22 = vld [vmem:[#allocation2 + $0xc8] sm:$0xff]  ;;  %v162_v24 = vld [vmem:[#allocation2 + $0xc0] sm:$0xff] }
  0x15   :  { %96 = vmatpush1.msra.mxu0 %v41_v12  ;;  %356 = vmatpush3.msra.mxu1 %v151_v15  ;;  %v147_v23 = vld [vmem:[#allocation2 + $0x48] sm:$0xff]  ;;  %v146_v25 = vld [vmem:[#allocation2 + $0x40] sm:$0xff]  ;;  %v161_v26 = vld [vmem:[#allocation2 + $0xb8] sm:$0xff] }
  0x16   :  { %348 = vmatmul.mubr.msk.f32.vlgmr.msra.gmra.mxu0 %vm61_vm0, %v40_v14  ;;  %357 = vmatprep.subr.mxu1 %v166_v16  ;;  %v145_v27 = vld [vmem:[#allocation2 + $0x38] sm:$0xff]  ;;  %v160_v28 = vld [vmem:[#allocation2 + $0xb0] sm:$0xff]  ;;  %v159_v30 = vld [vmem:[#allocation2 + $0xa8] sm:$0xff] }
  0x17   :  { %403 = vmatprep.subr.mxu0 %v468_v0  ;;  %358 = vmatpush3.msra.mxu1 %v150_v17  ;;  %v144_v29 = vld [vmem:[#allocation2 + $0x30] sm:$0xff]  ;;  %v143_v31 = vld [vmem:[#allocation2 + $0x28] sm:$0xff]  ;;  %v158_v32 = vld [vmem:[#allocation2 + $0xa0] sm:$0xff] }
  0x18   :  { %359 = vmatprep.subr.mxu1 %v165_v18  ;;  %v142_v33 = vld [vmem:[#allocation2 + $0x20] sm:$0xff]  ;;  %v157_v34 = vld [vmem:[#allocation2 + $0x98] sm:$0xff]  ;;  %v156_v36 = vld [vmem:[#allocation2 + $0x90] sm:$0xff]  ;;  %435 = vmatprep.mubr.msk.f32.mxu0 %vm469_vm1, %v468_v0 }
  0x19   :  { %360 = vmatpush3.msra.mxu1 %v149_v19  ;;  %v141_v35 = vld [vmem:[#allocation2 + $0x18] sm:$0xff]  ;;  %v140_v37 = vld [vmem:[#allocation2 + $0x10] sm:$0xff]  ;;  %v155_v38 = vld [vmem:[#allocation2 + $0x88] sm:$0xff] }
  0x1a   :  { %361 = vmatprep.subr.mxu1 %v164_v20  ;;  %v139_v39 = vld [vmem:[#allocation2 + $0x8] sm:$0xff]  ;;  %v154_v40 = vld [vmem:[#allocation2 + $0x80] sm:$0xff]  ;;  %v263_v42 = vld [vmem:[%s623_s5 + $0x78] sm:$0xff] }
  0x1b   :  { %362 = vmatpush3.msra.mxu1 %v148_v21  ;;  %v138_v41 = vld [vmem:[#allocation2] sm:$0xff]  ;;  %v262_v43 = vld [vmem:[%s623_s5 + $0x70] sm:$0xff]  ;;  %404 = vmatpush3.msra.mxu0 %v263_v42  ;;  %v261_v44 = vld [vmem:[%s623_s5 + $0x68] sm:$0xff] }
  0x1c   :  { %363 = vmatprep.subr.mxu1 %v163_v22  ;;  %405 = vmatprep.subr.mxu0 %v468_v0  ;;  %v260_v45 = vld [vmem:[%s623_s5 + $0x60] sm:$0xff]  ;;  %v259_v46 = vld [vmem:[%s623_s5 + $0x58] sm:$0xff]  ;;  %v258_v47 = vld [vmem:[%s623_s5 + $0x50] sm:$0xff] }
  0x1d   :  { %364 = vmatpush3.msra.mxu1 %v147_v23  ;;  %406 = vmatpush3.msra.mxu0 %v262_v43  ;;  %v257_v48 = vld [vmem:[%s623_s5 + $0x48] sm:$0xff]  ;;  %v256_v49 = vld [vmem:[%s623_s5 + $0x40] sm:$0xff]  ;;  %v255_v50 = vld [vmem:[%s623_s5 + $0x38] sm:$0xff] }
  0x1e   :  { %365 = vmatprep.subr.mxu1 %v162_v24  ;;  %407 = vmatprep.subr.mxu0 %v468_v0  ;;  %v254_v51 = vld [vmem:[%s623_s5 + $0x30] sm:$0xff]  ;;  %v253_v52 = vld [vmem:[%s623_s5 + $0x28] sm:$0xff]  ;;  %v49_v56 = vld [vmem:[%s620_s2] sm:$0x3] }
  0x1f   :  { %366 = vmatpush3.msra.mxu1 %v146_v25  ;;  %408 = vmatpush3.msra.mxu0 %v261_v44  ;;  %v54_v58 = vrot.slane %v49_v56, %v53_v55  ;;  %v58_v59 = vrot.slane %v49_v56, %v57_v57  ;;  %v252_v3 = vld [vmem:[%s623_s5 + $0x20] sm:$0xff]  ;;  %v251_v4 = vld [vmem:[%s623_s5 + $0x18] sm:$0xff]  ;;  %v250_v5 = vld [vmem:[%s623_s5 + $0x10] sm:$0xff] }
  0x20   :  { %367 = vmatprep.subr.mxu1 %v161_v26  ;;  %409 = vmatprep.subr.mxu0 %v468_v0  ;;  %v249_v6 = vld [vmem:[%s623_s5 + $0x8] sm:$0xff]  ;;  %v248_v7 = vld [vmem:[%s623_s5] sm:$0xff] }
  0x21   :  { %368 = vmatpush3.msra.mxu1 %v145_v27  ;;  %410 = vmatpush3.msra.mxu0 %v260_v45  ;;  %v349_v9 = vld [vmem:[%s622_s4] ss:$0 sm:$0xff] }
  0x22   :  { %369 = vmatprep.subr.mxu1 %v160_v28  ;;  %411 = vmatprep.subr.mxu0 %v468_v0  ;;  %v350_v14 = vld [vmem:[%s624_s6] ss:$0 sm:$0xff] }
  0x23   :  { %370 = vmatpush3.msra.mxu1 %v144_v29  ;;  %412 = vmatpush3.msra.mxu0 %v259_v46 }
  0x24   :  { %371 = vmatprep.subr.mxu1 %v159_v30  ;;  %413 = vmatprep.subr.mxu0 %v468_v0 }
  0x25   :  { %372 = vmatpush3.msra.mxu1 %v143_v31  ;;  %414 = vmatpush3.msra.mxu0 %v258_v47 }
  0x26   :  { %373 = vmatprep.subr.mxu1 %v158_v32  ;;  %415 = vmatprep.subr.mxu0 %v468_v0 }
  0x27   :  { %374 = vmatpush3.msra.mxu1 %v142_v33  ;;  %416 = vmatpush3.msra.mxu0 %v257_v48 }
  0x28   :  { %375 = vmatprep.subr.mxu1 %v157_v34  ;;  %417 = vmatprep.subr.mxu0 %v468_v0 }
  0x29   :  { %376 = vmatpush3.msra.mxu1 %v141_v35  ;;  %418 = vmatpush3.msra.mxu0 %v256_v49 }
  0x2a   :  { %377 = vmatprep.subr.mxu1 %v156_v36  ;;  %419 = vmatprep.subr.mxu0 %v468_v0 }
  0x2b   :  { %378 = vmatpush3.msra.mxu1 %v140_v37  ;;  %420 = vmatpush3.msra.mxu0 %v255_v50 }
  0x2c   :  { %379 = vmatprep.subr.mxu1 %v155_v38  ;;  %421 = vmatprep.subr.mxu0 %v468_v0 }
  0x2d   :  { %380 = vmatpush3.msra.mxu1 %v139_v39  ;;  %422 = vmatpush3.msra.mxu0 %v254_v51 }
  0x2e   :  { %381 = vmatprep.subr.mxu1 %v154_v40  ;;  %423 = vmatprep.subr.mxu0 %v468_v0 }
  0x2f   :  { %382 = vmatpush3.msra.mxu1 %v138_v41  ;;  %424 = vmatpush3.msra.mxu0 %v253_v52 }
  0x30   :  { %425 = vmatprep.subr.mxu0 %v468_v0 }
  0x31   :  { %426 = vmatpush3.msra.mxu0 %v252_v3 }
  0x32   :  { %427 = vmatprep.subr.mxu0 %v468_v0 }
  0x33   :  { %428 = vmatpush3.msra.mxu0 %v251_v4 }
  0x34   :  { %429 = vmatprep.subr.mxu0 %v468_v0 }
  0x35   :  { %430 = vmatpush3.msra.mxu0 %v250_v5 }
  0x36   :  { %431 = vmatprep.subr.mxu0 %v468_v0 }
  0x37   :  { %432 = vmatpush3.msra.mxu0 %v249_v6 }
  0x38   :  { %433 = vmatprep.subr.mxu0 %v468_v0 }
  0x39   :  { %434 = vmatpush3.msra.mxu0 %v248_v7 }
  0xd6   :  { %v131_v60 = vpop.f32.mrf.mxu0 }
  0xd7   :  { %v132_v61 = vadd.f32 %v131_v60, %v54_v58 }
  0xd8   :  { %v133_v62 = vpop.f32.mrf.mxu0 }
  0xd9   :  { %v134_v63 = vadd.f32 %v133_v62, %v58_v59  ;;  %v136_v2 = vmax.f32 %v132_v61, 0.0 }
  0xdb   :  { %v137_v1 = vmax.f32 %v134_v63, 0.0 }
  0xdd   :  { %241 = vmatprep.mubr.f32.mxu1 %v137_v1 }
  0xde   :  { %242 = vmatmul.mubr.f32.vlgmr.msra.gmra.mxu1 %v136_v2 }
 0x19e   :  { %v383_v8 = vpop.f32.mrf.mxu1 }
 0x1a0   :  { %v384_v10 = vpop.f32.mrf.mxu1 }
 0x1a1   :  { %v385_v11 = vadd.f32 %v384_v10, %v383_v8 }
 0x1a3   :  { %v244_v12 = vadd.f32 %v385_v11, %v349_v9 }
 0x1a5   :  { %v247_v13 = vmax.f32 %v244_v12, 0.0 }
 0x1a7   :  { %436 = vmatmul.mubr.f32.vlgmr.msra.gmra.mxu0 %v247_v13 }
 0x267   :  { %v337_v15 = vpop.f32.mrf.mxu0 }
 0x268   :  { %v338_v16 = vadd.f32 %v350_v14, %v337_v15 }
 0x269   :  { %v437_v17 = vpop.f32.mrf.mxu0 }
 0x26a   :  { %342 = vst.msk [vmem:[%s625_s7] sm:$0xff] %vm341_vm2, %v338_v16 }
 0x26b   :  { %347 = vsyncpa [#allocation3], 1 }

</bundles_post_ra>
